<compile_context>
chip_gen: v5e
topology: v5e:2x2
jax: 0.10.0
libtpu: 0.0.40
codegen_flags: <defaults>
</compile_context>

<pallas_src>
import numpy as np
import jax
import jax.numpy as jnp
from jax.experimental import pallas as pl
from jax.experimental.pallas import tpu as pltpu

IN_DIM = 22
H_DIM = 60
LAYER_NUM = 6
OUT_DIM = 1
BN_EPS = 1e-5

PAD = 64                              # zero-padded feature width
N_BN_LAYERS = 1 + LAYER_NUM           # input layer + 6 hidden layers (Linear+BN+ReLU each)

# Single merged parameter slab, shape (SLAB_ROWS, PAD) = (464, 64):
#   rows [i*64, (i+1)*64) for i in 0..6 : layer-i weight (stored as (in, out) for x @ W)
#   rows 448..454 : BN gamma for layers 0..6
#   rows 455..461 : BN beta  for layers 0..6
#   row  462      : output-layer weight (60,), zero-padded
#   row  463      : output-layer bias replicated across all lanes
P_BASE = N_BN_LAYERS * PAD            # 448
ROW_GAMMA0 = P_BASE                   # 448
ROW_BETA0 = P_BASE + N_BN_LAYERS      # 455
ROW_WOUT = P_BASE + 2 * N_BN_LAYERS   # 462
ROW_BOUT = ROW_WOUT + 1               # 463
SLAB_ROWS = ROW_BOUT + 1              # 464  (multiple of 8)


def mlp_kernel(x_ref, slab_ref, out_ref, xpad_ref):
    # Zero-pad the (n, IN_DIM) input to (n, PAD) in VMEM (masked lane store);
    # no separate wrapper-side pad kernel.
    xpad_ref[...] = jnp.zeros_like(xpad_ref)
    xpad_ref[:, :IN_DIM] = x_ref[...]
    h = xpad_ref[...]                                                  # (n, PAD)

    for i in range(N_BN_LAYERS):
        # Linear (pre-BN bias dropped: it cancels exactly under training-mode BN)
        w = slab_ref[i * PAD:(i + 1) * PAD, :]                         # (PAD, PAD)
        z = jnp.dot(h, w, preferred_element_type=jnp.float32)          # (n, PAD)

        # Training-mode BatchNorm1d, one-pass stats, fused to one FMA + ReLU.
        mean = jnp.mean(z, axis=0, keepdims=True)                      # (1, PAD)
        mean_sq = jnp.mean(z * z, axis=0, keepdims=True)               # (1, PAD)
        var = jnp.maximum(mean_sq - mean * mean, 0.0)                  # biased variance
        gamma = slab_ref[ROW_GAMMA0 + i:ROW_GAMMA0 + i + 1, :]         # (1, PAD)
        beta = slab_ref[ROW_BETA0 + i:ROW_BETA0 + i + 1, :]            # (1, PAD)
        scale = gamma * jax.lax.rsqrt(var + BN_EPS)
        shift = beta - mean * scale
        h = jnp.maximum(z * scale + shift, 0.0)

    # Output layer (K=60, N=1): VPU multiply + lane reduce, skip the MXU.
    w_out = slab_ref[ROW_WOUT:ROW_WOUT + 1, :]                         # (1, PAD)
    b_row = slab_ref[ROW_BOUT:ROW_BOUT + 1, :]                         # (1, PAD), bias replicated
    y = jnp.sum(h * w_out, axis=-1, keepdims=True) + b_row[:, 0:1]     # (n, 1)
    out_ref[...] = y


def mlp_forward(x, slab):
    n = x.shape[0]
    vmem = pl.BlockSpec(memory_space=pltpu.MemorySpace.VMEM)
    return pl.pallas_call(
        mlp_kernel,
        out_shape=jax.ShapeDtypeStruct((n, OUT_DIM), jnp.float32),
        in_specs=[vmem, vmem],
        out_specs=vmem,
        scratch_shapes=[pltpu.VMEM((n, PAD), jnp.float32)],
    )(x, slab)


def xavier_uniform(key, fan_in, fan_out, gain):
    limit = gain * np.sqrt(6.0 / (fan_in + fan_out))
    # stored transposed as (in, out) for `x @ W`
    return jax.random.uniform(key, (fan_in, fan_out), jnp.float32,
                              minval=-limit, maxval=limit)


def init_params(key):
    gain = float(np.sqrt(2.0))
    keys = jax.random.split(key, LAYER_NUM + 2)
    p = {}
    p["w_in"] = xavier_uniform(keys[0], IN_DIM, H_DIM, gain)           # (22, 60)
    p["b_in"] = jnp.full((H_DIM,), 0.01, jnp.float32)
    p["g_in"] = jnp.ones((H_DIM,), jnp.float32)                        # BN weight init = 1
    p["be_in"] = jnp.zeros((H_DIM,), jnp.float32)                      # BN bias init = 0
    p["w_h"] = jnp.stack([xavier_uniform(keys[1 + i], H_DIM, H_DIM, gain)
                          for i in range(LAYER_NUM)], axis=0)          # (6, 60, 60)
    p["b_h"] = jnp.full((LAYER_NUM, H_DIM), 0.01, jnp.float32)
    p["g_h"] = jnp.ones((LAYER_NUM, H_DIM), jnp.float32)
    p["be_h"] = jnp.zeros((LAYER_NUM, H_DIM), jnp.float32)
    p["w_out"] = xavier_uniform(keys[-1], H_DIM, OUT_DIM, gain)        # (60, 1)
    p["b_out"] = jnp.full((OUT_DIM,), 0.01, jnp.float32)
    return p


def pack_params(p):
    """Pack everything into one zero-padded (464, 64) slab (1 parameter DMA per call).

    The dead pre-BN biases (b_in, b_h) are intentionally not packed.
    """
    s = np.zeros((SLAB_ROWS, PAD), np.float32)
    s[0:IN_DIM, :H_DIM] = np.asarray(p["w_in"])
    w_h = np.asarray(p["w_h"])
    for i in range(LAYER_NUM):
        base = (1 + i) * PAD
        s[base:base + H_DIM, :H_DIM] = w_h[i]
    s[ROW_GAMMA0, :H_DIM] = np.asarray(p["g_in"])
    s[ROW_GAMMA0 + 1:ROW_GAMMA0 + 1 + LAYER_NUM, :H_DIM] = np.asarray(p["g_h"])
    s[ROW_BETA0, :H_DIM] = np.asarray(p["be_in"])
    s[ROW_BETA0 + 1:ROW_BETA0 + 1 + LAYER_NUM, :H_DIM] = np.asarray(p["be_h"])
    s[ROW_WOUT, :H_DIM] = np.asarray(p["w_out"])[:, 0]
    s[ROW_BOUT, :] = float(np.asarray(p["b_out"])[0])                  # replicated across lanes
    return jnp.asarray(s)


def reference_forward(x, p):
    """Faithful pure-JAX reference of the PyTorch module (biases + standard two-pass BN)."""
    def bn_relu(h, gamma, beta):
        mean = jnp.mean(h, axis=0, keepdims=True)
        var = jnp.mean((h - mean) ** 2, axis=0, keepdims=True)
        return jnp.maximum((h - mean) * jax.lax.rsqrt(var + BN_EPS) * gamma + beta, 0.0)

    h = x @ p["w_in"] + p["b_in"]
    h = bn_relu(h, p["g_in"], p["be_in"])
    for i in range(LAYER_NUM):
        h = h @ p["w_h"][i] + p["b_h"][i]
        h = bn_relu(h, p["g_h"][i], p["be_h"][i])
    return h @ p["w_out"] + p["b_out"]


if __name__ == "__main__":
    key = jax.random.PRNGKey(0)
    k_param, k_x = jax.random.split(key)
    params = init_params(k_param)
    slab = pack_params(params)

    batch = 8
    x = jax.random.normal(k_x, (batch, IN_DIM), jnp.float32)

    out = jax.block_until_ready(mlp_forward(x, slab))
    ref = jax.block_until_ready(reference_forward(x, params))
    np.testing.assert_allclose(np.asarray(out), np.asarray(ref), rtol=1e-5, atol=1e-5)

    print("KERNEL_OK")
</pallas_src>

<mosaic_0001>
module attributes {stable_mosaic.version = 11 : i64} {
  func.func @mlp_kernel(%arg0: memref<8x22xf32, #tpu.memory_space<vmem>>, %arg1: memref<464x64xf32, #tpu.memory_space<vmem>>, %arg2: memref<8x1xf32, #tpu.memory_space<vmem>>, %arg3: memref<8x64xf32, #tpu.memory_space<vmem>>) attributes {dimension_semantics = [], scalar_prefetch = 0 : i64, scratch_operands = 1 : i64, tpu.core_type = #tpu.core_type<tc>} {
    %cst = arith.constant 0.000000e+00 : f32
    %0 = vector.broadcast %cst : f32 to vector<8x64xf32>
    %c0 = arith.constant 0 : index
    %c0_0 = arith.constant 0 : index
    %1 = vector.load %arg3[%c0, %c0_0] : memref<8x64xf32, #tpu.memory_space<vmem>>, vector<8x64xf32>
    tpu.vector_store %arg3[%c0, %c0_0], %0 {strides = array<i32>} : memref<8x64xf32, #tpu.memory_space<vmem>>, vector<8x64xf32>,
    %c0_1 = arith.constant 0 : index
    %c0_2 = arith.constant 0 : index
    %2 = vector.load %arg0[%c0_1, %c0_2] : memref<8x22xf32, #tpu.memory_space<vmem>>, vector<8x22xf32>
    %c0_3 = arith.constant 0 : index
    %c0_4 = arith.constant 0 : index
    %3 = vector.load %arg3[%c0_3, %c0_4] : memref<8x64xf32, #tpu.memory_space<vmem>>, vector<8x22xf32>
    tpu.vector_store %arg3[%c0_3, %c0_4], %2 {strides = array<i32>} : memref<8x64xf32, #tpu.memory_space<vmem>>, vector<8x22xf32>,
    %c0_5 = arith.constant 0 : index
    %c0_6 = arith.constant 0 : index
    %4 = vector.load %arg3[%c0_5, %c0_6] : memref<8x64xf32, #tpu.memory_space<vmem>>, vector<8x64xf32>
    %c0_7 = arith.constant 0 : index
    %c0_8 = arith.constant 0 : index
    %5 = vector.load %arg1[%c0_7, %c0_8] : memref<464x64xf32, #tpu.memory_space<vmem>>, vector<64x64xf32>
    %cst_9 = arith.constant dense<0.000000e+00> : vector<8x64xf32>
    %6 = tpu.matmul %4, %5, %cst_9 {dimension_numbers = #tpu.dot_dimension_numbers<[1], [0], [0], [1], [0, 0, 1, 1], [], []>} : vector<8x64xf32>, vector<64x64xf32>, vector<8x64xf32> -> vector<8x64xf32>
    %cst_10 = arith.constant dense<0.000000e+00> : vector<64xf32>
    %7 = vector.multi_reduction <add>, %6, %cst_10 [0] : vector<8x64xf32> to vector<64xf32>
    %8 = vector.shape_cast %7 : vector<64xf32> to vector<1x64xf32>
    %cst_11 = arith.constant 8.000000e+00 : f32
    %9 = vector.broadcast %cst_11 : f32 to vector<1x64xf32>
    %10 = arith.divf %8, %9 : vector<1x64xf32>
    %11 = arith.mulf %6, %6 : vector<8x64xf32>
    %cst_12 = arith.constant dense<0.000000e+00> : vector<64xf32>
    %12 = vector.multi_reduction <add>, %11, %cst_12 [0] : vector<8x64xf32> to vector<64xf32>
    %13 = vector.shape_cast %12 : vector<64xf32> to vector<1x64xf32>
    %cst_13 = arith.constant 8.000000e+00 : f32
    %14 = vector.broadcast %cst_13 : f32 to vector<1x64xf32>
    %15 = arith.divf %13, %14 : vector<1x64xf32>
    %16 = arith.mulf %10, %10 : vector<1x64xf32>
    %17 = arith.subf %15, %16 : vector<1x64xf32>
    %cst_14 = arith.constant 0.000000e+00 : f32
    %18 = vector.broadcast %cst_14 : f32 to vector<1x64xf32>
    %19 = arith.maximumf %17, %18 : vector<1x64xf32>
    %c448 = arith.constant 448 : index
    %c0_15 = arith.constant 0 : index
    %20 = vector.load %arg1[%c448, %c0_15] : memref<464x64xf32, #tpu.memory_space<vmem>>, vector<1x64xf32>
    %c455 = arith.constant 455 : index
    %c0_16 = arith.constant 0 : index
    %21 = vector.load %arg1[%c455, %c0_16] : memref<464x64xf32, #tpu.memory_space<vmem>>, vector<1x64xf32>
    %cst_17 = arith.constant 9.99999974E-6 : f32
    %22 = vector.broadcast %cst_17 : f32 to vector<1x64xf32>
    %23 = arith.addf %19, %22 : vector<1x64xf32>
    %24 = math.rsqrt %23 : vector<1x64xf32>
    %25 = arith.mulf %20, %24 : vector<1x64xf32>
    %26 = arith.mulf %10, %25 : vector<1x64xf32>
    %27 = arith.subf %21, %26 : vector<1x64xf32>
    %28 = vector.broadcast %25 : vector<1x64xf32> to vector<8x64xf32>
    %29 = arith.mulf %6, %28 : vector<8x64xf32>
    %30 = vector.broadcast %27 : vector<1x64xf32> to vector<8x64xf32>
    %31 = arith.addf %29, %30 : vector<8x64xf32>
    %cst_18 = arith.constant 0.000000e+00 : f32
    %32 = vector.broadcast %cst_18 : f32 to vector<8x64xf32>
    %33 = arith.maximumf %31, %32 : vector<8x64xf32>
    %c64 = arith.constant 64 : index
    %c0_19 = arith.constant 0 : index
    %34 = vector.load %arg1[%c64, %c0_19] : memref<464x64xf32, #tpu.memory_space<vmem>>, vector<64x64xf32>
    %cst_20 = arith.constant dense<0.000000e+00> : vector<8x64xf32>
    %35 = tpu.matmul %33, %34, %cst_20 {dimension_numbers = #tpu.dot_dimension_numbers<[1], [0], [0], [1], [0, 0, 1, 1], [], []>} : vector<8x64xf32>, vector<64x64xf32>, vector<8x64xf32> -> vector<8x64xf32>
    %cst_21 = arith.constant dense<0.000000e+00> : vector<64xf32>
    %36 = vector.multi_reduction <add>, %35, %cst_21 [0] : vector<8x64xf32> to vector<64xf32>
    %37 = vector.shape_cast %36 : vector<64xf32> to vector<1x64xf32>
    %cst_22 = arith.constant 8.000000e+00 : f32
    %38 = vector.broadcast %cst_22 : f32 to vector<1x64xf32>
    %39 = arith.divf %37, %38 : vector<1x64xf32>
    %40 = arith.mulf %35, %35 : vector<8x64xf32>
    %cst_23 = arith.constant dense<0.000000e+00> : vector<64xf32>
    %41 = vector.multi_reduction <add>, %40, %cst_23 [0] : vector<8x64xf32> to vector<64xf32>
    %42 = vector.shape_cast %41 : vector<64xf32> to vector<1x64xf32>
    %cst_24 = arith.constant 8.000000e+00 : f32
    %43 = vector.broadcast %cst_24 : f32 to vector<1x64xf32>
    %44 = arith.divf %42, %43 : vector<1x64xf32>
    %45 = arith.mulf %39, %39 : vector<1x64xf32>
    %46 = arith.subf %44, %45 : vector<1x64xf32>
    %cst_25 = arith.constant 0.000000e+00 : f32
    %47 = vector.broadcast %cst_25 : f32 to vector<1x64xf32>
    %48 = arith.maximumf %46, %47 : vector<1x64xf32>
    %c449 = arith.constant 449 : index
    %c0_26 = arith.constant 0 : index
    %49 = vector.load %arg1[%c449, %c0_26] : memref<464x64xf32, #tpu.memory_space<vmem>>, vector<1x64xf32>
    %c456 = arith.constant 456 : index
    %c0_27 = arith.constant 0 : index
    %50 = vector.load %arg1[%c456, %c0_27] : memref<464x64xf32, #tpu.memory_space<vmem>>, vector<1x64xf32>
    %cst_28 = arith.constant 9.99999974E-6 : f32
    %51 = vector.broadcast %cst_28 : f32 to vector<1x64xf32>
    %52 = arith.addf %48, %51 : vector<1x64xf32>
    %53 = math.rsqrt %52 : vector<1x64xf32>
    %54 = arith.mulf %49, %53 : vector<1x64xf32>
    %55 = arith.mulf %39, %54 : vector<1x64xf32>
    %56 = arith.subf %50, %55 : vector<1x64xf32>
    %57 = vector.broadcast %54 : vector<1x64xf32> to vector<8x64xf32>
    %58 = arith.mulf %35, %57 : vector<8x64xf32>
    %59 = vector.broadcast %56 : vector<1x64xf32> to vector<8x64xf32>
    %60 = arith.addf %58, %59 : vector<8x64xf32>
    %cst_29 = arith.constant 0.000000e+00 : f32
    %61 = vector.broadcast %cst_29 : f32 to vector<8x64xf32>
    %62 = arith.maximumf %60, %61 : vector<8x64xf32>
    %c128 = arith.constant 128 : index
    %c0_30 = arith.constant 0 : index
    %63 = vector.load %arg1[%c128, %c0_30] : memref<464x64xf32, #tpu.memory_space<vmem>>, vector<64x64xf32>
    %cst_31 = arith.constant dense<0.000000e+00> : vector<8x64xf32>
    %64 = tpu.matmul %62, %63, %cst_31 {dimension_numbers = #tpu.dot_dimension_numbers<[1], [0], [0], [1], [0, 0, 1, 1], [], []>} : vector<8x64xf32>, vector<64x64xf32>, vector<8x64xf32> -> vector<8x64xf32>
    %cst_32 = arith.constant dense<0.000000e+00> : vector<64xf32>
    %65 = vector.multi_reduction <add>, %64, %cst_32 [0] : vector<8x64xf32> to vector<64xf32>
    %66 = vector.shape_cast %65 : vector<64xf32> to vector<1x64xf32>
    %cst_33 = arith.constant 8.000000e+00 : f32
    %67 = vector.broadcast %cst_33 : f32 to vector<1x64xf32>
    %68 = arith.divf %66, %67 : vector<1x64xf32>
    %69 = arith.mulf %64, %64 : vector<8x64xf32>
    %cst_34 = arith.constant dense<0.000000e+00> : vector<64xf32>
    %70 = vector.multi_reduction <add>, %69, %cst_34 [0] : vector<8x64xf32> to vector<64xf32>
    %71 = vector.shape_cast %70 : vector<64xf32> to vector<1x64xf32>
    %cst_35 = arith.constant 8.000000e+00 : f32
    %72 = vector.broadcast %cst_35 : f32 to vector<1x64xf32>
    %73 = arith.divf %71, %72 : vector<1x64xf32>
    %74 = arith.mulf %68, %68 : vector<1x64xf32>
    %75 = arith.subf %73, %74 : vector<1x64xf32>
    %cst_36 = arith.constant 0.000000e+00 : f32
    %76 = vector.broadcast %cst_36 : f32 to vector<1x64xf32>
    %77 = arith.maximumf %75, %76 : vector<1x64xf32>
    %c450 = arith.constant 450 : index
    %c0_37 = arith.constant 0 : index
    %78 = vector.load %arg1[%c450, %c0_37] : memref<464x64xf32, #tpu.memory_space<vmem>>, vector<1x64xf32>
    %c457 = arith.constant 457 : index
    %c0_38 = arith.constant 0 : index
    %79 = vector.load %arg1[%c457, %c0_38] : memref<464x64xf32, #tpu.memory_space<vmem>>, vector<1x64xf32>
    %cst_39 = arith.constant 9.99999974E-6 : f32
    %80 = vector.broadcast %cst_39 : f32 to vector<1x64xf32>
    %81 = arith.addf %77, %80 : vector<1x64xf32>
    %82 = math.rsqrt %81 : vector<1x64xf32>
    %83 = arith.mulf %78, %82 : vector<1x64xf32>
    %84 = arith.mulf %68, %83 : vector<1x64xf32>
    %85 = arith.subf %79, %84 : vector<1x64xf32>
    %86 = vector.broadcast %83 : vector<1x64xf32> to vector<8x64xf32>
    %87 = arith.mulf %64, %86 : vector<8x64xf32>
    %88 = vector.broadcast %85 : vector<1x64xf32> to vector<8x64xf32>
    %89 = arith.addf %87, %88 : vector<8x64xf32>
    %cst_40 = arith.constant 0.000000e+00 : f32
    %90 = vector.broadcast %cst_40 : f32 to vector<8x64xf32>
    %91 = arith.maximumf %89, %90 : vector<8x64xf32>
    %c192 = arith.constant 192 : index
    %c0_41 = arith.constant 0 : index
    %92 = vector.load %arg1[%c192, %c0_41] : memref<464x64xf32, #tpu.memory_space<vmem>>, vector<64x64xf32>
    %cst_42 = arith.constant dense<0.000000e+00> : vector<8x64xf32>
    %93 = tpu.matmul %91, %92, %cst_42 {dimension_numbers = #tpu.dot_dimension_numbers<[1], [0], [0], [1], [0, 0, 1, 1], [], []>} : vector<8x64xf32>, vector<64x64xf32>, vector<8x64xf32> -> vector<8x64xf32>
    %cst_43 = arith.constant dense<0.000000e+00> : vector<64xf32>
    %94 = vector.multi_reduction <add>, %93, %cst_43 [0] : vector<8x64xf32> to vector<64xf32>
    %95 = vector.shape_cast %94 : vector<64xf32> to vector<1x64xf32>
    %cst_44 = arith.constant 8.000000e+00 : f32
    %96 = vector.broadcast %cst_44 : f32 to vector<1x64xf32>
    %97 = arith.divf %95, %96 : vector<1x64xf32>
    %98 = arith.mulf %93, %93 : vector<8x64xf32>
    %cst_45 = arith.constant dense<0.000000e+00> : vector<64xf32>
    %99 = vector.multi_reduction <add>, %98, %cst_45 [0] : vector<8x64xf32> to vector<64xf32>
    %100 = vector.shape_cast %99 : vector<64xf32> to vector<1x64xf32>
    %cst_46 = arith.constant 8.000000e+00 : f32
    %101 = vector.broadcast %cst_46 : f32 to vector<1x64xf32>
    %102 = arith.divf %100, %101 : vector<1x64xf32>
    %103 = arith.mulf %97, %97 : vector<1x64xf32>
    %104 = arith.subf %102, %103 : vector<1x64xf32>
    %cst_47 = arith.constant 0.000000e+00 : f32
    %105 = vector.broadcast %cst_47 : f32 to vector<1x64xf32>
    %106 = arith.maximumf %104, %105 : vector<1x64xf32>
    %c451 = arith.constant 451 : index
    %c0_48 = arith.constant 0 : index
    %107 = vector.load %arg1[%c451, %c0_48] : memref<464x64xf32, #tpu.memory_space<vmem>>, vector<1x64xf32>
    %c458 = arith.constant 458 : index
    %c0_49 = arith.constant 0 : index
    %108 = vector.load %arg1[%c458, %c0_49] : memref<464x64xf32, #tpu.memory_space<vmem>>, vector<1x64xf32>
    %cst_50 = arith.constant 9.99999974E-6 : f32
    %109 = vector.broadcast %cst_50 : f32 to vector<1x64xf32>
    %110 = arith.addf %106, %109 : vector<1x64xf32>
    %111 = math.rsqrt %110 : vector<1x64xf32>
    %112 = arith.mulf %107, %111 : vector<1x64xf32>
    %113 = arith.mulf %97, %112 : vector<1x64xf32>
    %114 = arith.subf %108, %113 : vector<1x64xf32>
    %115 = vector.broadcast %112 : vector<1x64xf32> to vector<8x64xf32>
    %116 = arith.mulf %93, %115 : vector<8x64xf32>
    %117 = vector.broadcast %114 : vector<1x64xf32> to vector<8x64xf32>
    %118 = arith.addf %116, %117 : vector<8x64xf32>
    %cst_51 = arith.constant 0.000000e+00 : f32
    %119 = vector.broadcast %cst_51 : f32 to vector<8x64xf32>
    %120 = arith.maximumf %118, %119 : vector<8x64xf32>
    %c256 = arith.constant 256 : index
    %c0_52 = arith.constant 0 : index
    %121 = vector.load %arg1[%c256, %c0_52] : memref<464x64xf32, #tpu.memory_space<vmem>>, vector<64x64xf32>
    %cst_53 = arith.constant dense<0.000000e+00> : vector<8x64xf32>
    %122 = tpu.matmul %120, %121, %cst_53 {dimension_numbers = #tpu.dot_dimension_numbers<[1], [0], [0], [1], [0, 0, 1, 1], [], []>} : vector<8x64xf32>, vector<64x64xf32>, vector<8x64xf32> -> vector<8x64xf32>
    %cst_54 = arith.constant dense<0.000000e+00> : vector<64xf32>
    %123 = vector.multi_reduction <add>, %122, %cst_54 [0] : vector<8x64xf32> to vector<64xf32>
    %124 = vector.shape_cast %123 : vector<64xf32> to vector<1x64xf32>
    %cst_55 = arith.constant 8.000000e+00 : f32
    %125 = vector.broadcast %cst_55 : f32 to vector<1x64xf32>
    %126 = arith.divf %124, %125 : vector<1x64xf32>
    %127 = arith.mulf %122, %122 : vector<8x64xf32>
    %cst_56 = arith.constant dense<0.000000e+00> : vector<64xf32>
    %128 = vector.multi_reduction <add>, %127, %cst_56 [0] : vector<8x64xf32> to vector<64xf32>
    %129 = vector.shape_cast %128 : vector<64xf32> to vector<1x64xf32>
    %cst_57 = arith.constant 8.000000e+00 : f32
    %130 = vector.broadcast %cst_57 : f32 to vector<1x64xf32>
    %131 = arith.divf %129, %130 : vector<1x64xf32>
    %132 = arith.mulf %126, %126 : vector<1x64xf32>
    %133 = arith.subf %131, %132 : vector<1x64xf32>
    %cst_58 = arith.constant 0.000000e+00 : f32
    %134 = vector.broadcast %cst_58 : f32 to vector<1x64xf32>
    %135 = arith.maximumf %133, %134 : vector<1x64xf32>
    %c452 = arith.constant 452 : index
    %c0_59 = arith.constant 0 : index
    %136 = vector.load %arg1[%c452, %c0_59] : memref<464x64xf32, #tpu.memory_space<vmem>>, vector<1x64xf32>
    %c459 = arith.constant 459 : index
    %c0_60 = arith.constant 0 : index
    %137 = vector.load %arg1[%c459, %c0_60] : memref<464x64xf32, #tpu.memory_space<vmem>>, vector<1x64xf32>
    %cst_61 = arith.constant 9.99999974E-6 : f32
    %138 = vector.broadcast %cst_61 : f32 to vector<1x64xf32>
    %139 = arith.addf %135, %138 : vector<1x64xf32>
    %140 = math.rsqrt %139 : vector<1x64xf32>
    %141 = arith.mulf %136, %140 : vector<1x64xf32>
    %142 = arith.mulf %126, %141 : vector<1x64xf32>
    %143 = arith.subf %137, %142 : vector<1x64xf32>
    %144 = vector.broadcast %141 : vector<1x64xf32> to vector<8x64xf32>
    %145 = arith.mulf %122, %144 : vector<8x64xf32>
    %146 = vector.broadcast %143 : vector<1x64xf32> to vector<8x64xf32>
    %147 = arith.addf %145, %146 : vector<8x64xf32>
    %cst_62 = arith.constant 0.000000e+00 : f32
    %148 = vector.broadcast %cst_62 : f32 to vector<8x64xf32>
    %149 = arith.maximumf %147, %148 : vector<8x64xf32>
    %c320 = arith.constant 320 : index
    %c0_63 = arith.constant 0 : index
    %150 = vector.load %arg1[%c320, %c0_63] : memref<464x64xf32, #tpu.memory_space<vmem>>, vector<64x64xf32>
    %cst_64 = arith.constant dense<0.000000e+00> : vector<8x64xf32>
    %151 = tpu.matmul %149, %150, %cst_64 {dimension_numbers = #tpu.dot_dimension_numbers<[1], [0], [0], [1], [0, 0, 1, 1], [], []>} : vector<8x64xf32>, vector<64x64xf32>, vector<8x64xf32> -> vector<8x64xf32>
    %cst_65 = arith.constant dense<0.000000e+00> : vector<64xf32>
    %152 = vector.multi_reduction <add>, %151, %cst_65 [0] : vector<8x64xf32> to vector<64xf32>
    %153 = vector.shape_cast %152 : vector<64xf32> to vector<1x64xf32>
    %cst_66 = arith.constant 8.000000e+00 : f32
    %154 = vector.broadcast %cst_66 : f32 to vector<1x64xf32>
    %155 = arith.divf %153, %154 : vector<1x64xf32>
    %156 = arith.mulf %151, %151 : vector<8x64xf32>
    %cst_67 = arith.constant dense<0.000000e+00> : vector<64xf32>
    %157 = vector.multi_reduction <add>, %156, %cst_67 [0] : vector<8x64xf32> to vector<64xf32>
    %158 = vector.shape_cast %157 : vector<64xf32> to vector<1x64xf32>
    %cst_68 = arith.constant 8.000000e+00 : f32
    %159 = vector.broadcast %cst_68 : f32 to vector<1x64xf32>
    %160 = arith.divf %158, %159 : vector<1x64xf32>
    %161 = arith.mulf %155, %155 : vector<1x64xf32>
    %162 = arith.subf %160, %161 : vector<1x64xf32>
    %cst_69 = arith.constant 0.000000e+00 : f32
    %163 = vector.broadcast %cst_69 : f32 to vector<1x64xf32>
    %164 = arith.maximumf %162, %163 : vector<1x64xf32>
    %c453 = arith.constant 453 : index
    %c0_70 = arith.constant 0 : index
    %165 = vector.load %arg1[%c453, %c0_70] : memref<464x64xf32, #tpu.memory_space<vmem>>, vector<1x64xf32>
    %c460 = arith.constant 460 : index
    %c0_71 = arith.constant 0 : index
    %166 = vector.load %arg1[%c460, %c0_71] : memref<464x64xf32, #tpu.memory_space<vmem>>, vector<1x64xf32>
    %cst_72 = arith.constant 9.99999974E-6 : f32
    %167 = vector.broadcast %cst_72 : f32 to vector<1x64xf32>
    %168 = arith.addf %164, %167 : vector<1x64xf32>
    %169 = math.rsqrt %168 : vector<1x64xf32>
    %170 = arith.mulf %165, %169 : vector<1x64xf32>
    %171 = arith.mulf %155, %170 : vector<1x64xf32>
    %172 = arith.subf %166, %171 : vector<1x64xf32>
    %173 = vector.broadcast %170 : vector<1x64xf32> to vector<8x64xf32>
    %174 = arith.mulf %151, %173 : vector<8x64xf32>
    %175 = vector.broadcast %172 : vector<1x64xf32> to vector<8x64xf32>
    %176 = arith.addf %174, %175 : vector<8x64xf32>
    %cst_73 = arith.constant 0.000000e+00 : f32
    %177 = vector.broadcast %cst_73 : f32 to vector<8x64xf32>
    %178 = arith.maximumf %176, %177 : vector<8x64xf32>
    %c384 = arith.constant 384 : index
    %c0_74 = arith.constant 0 : index
    %179 = vector.load %arg1[%c384, %c0_74] : memref<464x64xf32, #tpu.memory_space<vmem>>, vector<64x64xf32>
    %cst_75 = arith.constant dense<0.000000e+00> : vector<8x64xf32>
    %180 = tpu.matmul %178, %179, %cst_75 {dimension_numbers = #tpu.dot_dimension_numbers<[1], [0], [0], [1], [0, 0, 1, 1], [], []>} : vector<8x64xf32>, vector<64x64xf32>, vector<8x64xf32> -> vector<8x64xf32>
    %cst_76 = arith.constant dense<0.000000e+00> : vector<64xf32>
    %181 = vector.multi_reduction <add>, %180, %cst_76 [0] : vector<8x64xf32> to vector<64xf32>
    %182 = vector.shape_cast %181 : vector<64xf32> to vector<1x64xf32>
    %cst_77 = arith.constant 8.000000e+00 : f32
    %183 = vector.broadcast %cst_77 : f32 to vector<1x64xf32>
    %184 = arith.divf %182, %183 : vector<1x64xf32>
    %185 = arith.mulf %180, %180 : vector<8x64xf32>
    %cst_78 = arith.constant dense<0.000000e+00> : vector<64xf32>
    %186 = vector.multi_reduction <add>, %185, %cst_78 [0] : vector<8x64xf32> to vector<64xf32>
    %187 = vector.shape_cast %186 : vector<64xf32> to vector<1x64xf32>
    %cst_79 = arith.constant 8.000000e+00 : f32
    %188 = vector.broadcast %cst_79 : f32 to vector<1x64xf32>
    %189 = arith.divf %187, %188 : vector<1x64xf32>
    %190 = arith.mulf %184, %184 : vector<1x64xf32>
    %191 = arith.subf %189, %190 : vector<1x64xf32>
    %cst_80 = arith.constant 0.000000e+00 : f32
    %192 = vector.broadcast %cst_80 : f32 to vector<1x64xf32>
    %193 = arith.maximumf %191, %192 : vector<1x64xf32>
    %c454 = arith.constant 454 : index
    %c0_81 = arith.constant 0 : index
    %194 = vector.load %arg1[%c454, %c0_81] : memref<464x64xf32, #tpu.memory_space<vmem>>, vector<1x64xf32>
    %c461 = arith.constant 461 : index
    %c0_82 = arith.constant 0 : index
    %195 = vector.load %arg1[%c461, %c0_82] : memref<464x64xf32, #tpu.memory_space<vmem>>, vector<1x64xf32>
    %cst_83 = arith.constant 9.99999974E-6 : f32
    %196 = vector.broadcast %cst_83 : f32 to vector<1x64xf32>
    %197 = arith.addf %193, %196 : vector<1x64xf32>
    %198 = math.rsqrt %197 : vector<1x64xf32>
    %199 = arith.mulf %194, %198 : vector<1x64xf32>
    %200 = arith.mulf %184, %199 : vector<1x64xf32>
    %201 = arith.subf %195, %200 : vector<1x64xf32>
    %202 = vector.broadcast %199 : vector<1x64xf32> to vector<8x64xf32>
    %203 = arith.mulf %180, %202 : vector<8x64xf32>
    %204 = vector.broadcast %201 : vector<1x64xf32> to vector<8x64xf32>
    %205 = arith.addf %203, %204 : vector<8x64xf32>
    %cst_84 = arith.constant 0.000000e+00 : f32
    %206 = vector.broadcast %cst_84 : f32 to vector<8x64xf32>
    %207 = arith.maximumf %205, %206 : vector<8x64xf32>
    %c462 = arith.constant 462 : index
    %c0_85 = arith.constant 0 : index
    %208 = vector.load %arg1[%c462, %c0_85] : memref<464x64xf32, #tpu.memory_space<vmem>>, vector<1x64xf32>
    %c463 = arith.constant 463 : index
    %c0_86 = arith.constant 0 : index
    %209 = vector.load %arg1[%c463, %c0_86] : memref<464x64xf32, #tpu.memory_space<vmem>>, vector<1x64xf32>
    %210 = vector.broadcast %208 : vector<1x64xf32> to vector<8x64xf32>
    %211 = arith.mulf %207, %210 : vector<8x64xf32>
    %cst_87 = arith.constant dense<0.000000e+00> : vector<8xf32>
    %212 = vector.multi_reduction <add>, %211, %cst_87 [1] : vector<8x64xf32> to vector<8xf32>
    %213 = vector.shape_cast %212 : vector<8xf32> to vector<8x1xf32>
    %214 = vector.extract_strided_slice %209 {offsets = [0, 0], sizes = [1, 1], strides = [1, 1]} : vector<1x64xf32> to vector<1x1xf32>
    %215 = vector.broadcast %214 : vector<1x1xf32> to vector<8x1xf32>
    %216 = arith.addf %213, %215 : vector<8x1xf32>
    %c0_88 = arith.constant 0 : index
    %c0_89 = arith.constant 0 : index
    %217 = vector.load %arg2[%c0_88, %c0_89] : memref<8x1xf32, #tpu.memory_space<vmem>>, vector<8x1xf32>
    tpu.vector_store %arg2[%c0_88, %c0_89], %216 {strides = array<i32>} : memref<8x1xf32, #tpu.memory_space<vmem>>, vector<8x1xf32>,
    return
  }
}

</mosaic_0001>

<bundles_post_ra>
// kernel: tpu_custom_call.1
= control target key start
LH: loop header
LB: loop body
LE: loop exit
PB: predicated region body
PF: predicated region fallthrough
CT: control target
= control target key end

     0   :  { %vm11_vm0 = vcmask 523264   ;;  %v570_v2 = vmov 0.0   ;;  %vm14_vm1 = vcmask 179200   ;;  %v571_v11 = vmov 8.0   ;;  %s848_s1 = inlined_call_operand.vmem [shape: f32[464,64], index: 1, kind: input, shape index: {}]   ;;  %s849_s0 = inlined_call_operand.vmem [shape: f32[8,22], index: 0, kind: input, shape index: {}]   ;;  %s850_s2 = inlined_call_operand.vmem [shape: f32[8,1], index: 2, kind: output, shape index: {}]  }
   0x1   :  { %v24_v0 = vld [vmem:[%s848_s1 + $0x38] sm:$0xff]  ;;  %v23_v1 = vld [vmem:[%s848_s1 + $0x30] sm:$0xff]  ;;  %12 = vst.msk [vmem:[#allocation2] sm:$0xff] %vm11_vm0, %v570_v2  ;;  %v22_v3 = vld [vmem:[%s848_s1 + $0x28] sm:$0xff]  ;;  %554 = vrcp.f32 %v571_v11 }
   0x2   :  { %36 = vmatpush.msra.mxu0 %v24_v0  ;;  %v13_v4 = vld [vmem:[%s849_s0] sm:$0xff]  ;;  %v20_v6 = vld [vmem:[%s848_s1 + $0x18] sm:$0xff]  ;;  %v19_v7 = vld [vmem:[%s848_s1 + $0x10] sm:$0xff] }
   0x3   :  { %15 = vst.msk [vmem:[#allocation2] sm:$0xff] %vm14_vm1, %v13_v4  ;;  %v21_v5 = vld [vmem:[%s848_s1 + $0x20] sm:$0xff]  ;;  %v18_v8 = vld [vmem:[%s848_s1 + $0x8] sm:$0xff]  ;;  %v103_v25 = vld [vmem:[%s848_s1 + $0x78] sm:$0xff] }
   0x4   :  { %37 = vmatpush.msra.mxu0 %v23_v1  ;;  %v17_v9 = vld [vmem:[%s848_s1] sm:$0xff]  ;;  %115 = vmatpush.msra.mxu1 %v103_v25  ;;  %v102_v29 = vld [vmem:[%s848_s1 + $0x70] sm:$0xff]  ;;  %v101_v32 = vld [vmem:[%s848_s1 + $0x68] sm:$0xff] }
   0x5   :  { %v100_v36 = vld [vmem:[%s848_s1 + $0x60] sm:$0xff]  ;;  %v99_v39 = vld [vmem:[%s848_s1 + $0x58] sm:$0xff]  ;;  %v98_v40 = vld [vmem:[%s848_s1 + $0x50] sm:$0xff] }
   0x6   :  { %38 = vmatpush.msra.mxu0 %v22_v3  ;;  %116 = vmatpush.msra.mxu1 %v102_v29  ;;  %v97_v43 = vld [vmem:[%s848_s1 + $0x48] sm:$0xff]  ;;  %v96_v45 = vld [vmem:[%s848_s1 + $0x40] sm:$0xff] }
   0x7   :  { %v555_v12 = vpop.eup %554  ;;  %v75_v53 = vld [vmem:[%s848_s1 + $0x1c0] sm:$0x1]  ;;  %v76_v57 = vld [vmem:[%s848_s1 + $0x1c7] sm:$0x1] }
   0x8   :  { %39 = vmatpush.msra.mxu0 %v21_v5  ;;  %v56_v13 = vmul.f32 8.0, %v555_v12  ;;  %vm60_vm2 = vweird.f32 %v555_v12  ;;  %117 = vmatpush.msra.mxu1 %v101_v32 }
   0xa   :  { %40 = vmatpush.msra.mxu0 %v20_v6  ;;  %v16_v10 = vld [vmem:[#allocation2] sm:$0xff]  ;;  %v57_v14 = vsub.f32 1.0, %v56_v13  ;;  %118 = vmatpush.msra.mxu1 %v100_v36  ;;  %v174_v13 = vld [vmem:[%s848_s1 + $0xb0] sm:$0xff] }
   0xc   :  { %41 = vmatpush.msra.mxu0 %v19_v7  ;;  %v58_v19 = vmul.f32 %v555_v12, %v57_v14  ;;  %119 = vmatpush.msra.mxu1 %v99_v39 }
   0xe   :  { %42 = vmatpush.msra.mxu0 %v18_v8  ;;  %v59_v26 = vadd.f32 %v555_v12, %v58_v19  ;;  %120 = vmatpush.msra.mxu1 %v98_v40  ;;  %v172_v19 = vld [vmem:[%s848_s1 + $0xa0] sm:$0xff] }
  0x10   :  { %43 = vmatpush.msra.mxu0 %v17_v9  ;;  %v627_v33 = vsel %vm60_vm2, %v555_v12, %v59_v26  ;;  %121 = vmatpush.msra.mxu1 %v97_v43  ;;  %v169_v26 = vld [vmem:[%s848_s1 + $0x88] sm:$0xff] }
  0x11   :  { %543 = vmatmul.msk.f32.vlgmr.msra.gmra.mxu0 %vm11_vm0, %v16_v10  ;;  %v175_v10 = vld [vmem:[%s848_s1 + $0xb8] sm:$0xff] }
  0x12   :  { %122 = vmatpush.msra.mxu1 %v96_v45  ;;  %187 = vmatpush.msra.mxu2 %v175_v10  ;;  %v241_v10 = vld [vmem:[%s848_s1 + $0xc8] sm:$0xff] }
  0x14   :  { %188 = vmatpush.msra.mxu2 %v174_v13 }
  0x8e   :  { %v45_v15 = vpop.f32.mrf.mxu0 }
  0x8f   :  { %v48_v16 = vsel %vm11_vm0, %v45_v15, 0.0  ;;  %v63_v17 = vmul.f32 %v45_v15, %v45_v15 }
  0x90   :  { %v49_v18 = vrot.slane %v48_v16, 4 }
  0x91   :  { %v64_v20 = vsel %vm11_vm0, %v63_v17, 0.0 }
  0x92   :  { %v50_v21 = vadd.f32 %v49_v18, %v48_v16  ;;  %v65_v22 = vrot.slane %v64_v20, 4  ;;  %v173_v16 = vld [vmem:[%s848_s1 + $0xa8] sm:$0xff] }
  0x93   :  { %189 = vmatpush.msra.mxu2 %v173_v16 }
  0x94   :  { %v51_v23 = vrot.slane %v50_v21, 2  ;;  %v66_v24 = vadd.f32 %v65_v22, %v64_v20  ;;  %v171_v22 = vld [vmem:[%s848_s1 + $0x98] sm:$0xff] }
  0x95   :  { %190 = vmatpush.msra.mxu2 %v172_v19 }
  0x96   :  { %v52_v27 = vadd.f32 %v51_v23, %v50_v21  ;;  %v67_v28 = vrot.slane %v66_v24, 2  ;;  %v170_v23 = vld [vmem:[%s848_s1 + $0x90] sm:$0xff] }
  0x97   :  { %191 = vmatpush.msra.mxu2 %v171_v22 }
  0x98   :  { %v53_v30 = vrot.slane %v52_v27, 1  ;;  %v68_v31 = vadd.f32 %v67_v28, %v66_v24  ;;  %v168_v28 = vld [vmem:[%s848_s1 + $0x80] sm:$0xff] }
  0x99   :  { %192 = vmatpush.msra.mxu2 %v170_v23 }
  0x9a   :  { %v54_v34 = vadd.f32 %v53_v30, %v52_v27  ;;  %v69_v35 = vrot.slane %v68_v31, 1 }
  0x9b   :  { %193 = vmatpush.msra.mxu2 %v169_v26 }
  0x9c   :  { %v62_v37 = vmul.f32 %v627_v33, %v54_v34  ;;  %v70_v38 = vadd.f32 %v69_v35, %v68_v31 }
  0x9d   :  { %194 = vmatpush.msra.mxu2 %v168_v28 }
  0x9e   :  { %v71_v41 = vmul.f32 %v70_v38, %v627_v33  ;;  %v72_v42 = vmul.f32 %v62_v37, %v62_v37 }
  0xa0   :  { %v73_v44 = vsub.f32 %v71_v41, %v72_v42  ;;  %v148_v41 = vld [vmem:[%s848_s1 + $0x1c8] sm:$0x1] }
  0xa2   :  { %v74_v46 = vmax.f32 %v73_v44, 0.0 }
  0xa4   :  { %v77_v47 = vadd.f32 1e-05, %v74_v46 }
  0xa6   :  { %556 = vrsqrt.f32 %v77_v47  ;;  %vm84_vm4 = vweird.f32 %v77_v47 }
  0xac   :  { %v557_v48 = vpop.eup %556 }
  0xad   :  { %v79_v49 = vmul.f32 %v557_v48, %v77_v47  ;;  %vm85_vm3 = vweird.f32 %v557_v48 }
  0xae   :  { %vm86_vm5 = vmor %vm84_vm4, %vm85_vm3 }
  0xaf   :  { %v80_v50 = vmul.f32 %v557_v48, %v79_v49 }
  0xb1   :  { %v81_v51 = vmul.f32 0.5, %v80_v50 }
  0xb3   :  { %v82_v52 = vsub.f32 1.5, %v81_v51 }
  0xb5   :  { %v83_v54 = vmul.f32 %v557_v48, %v82_v52 }
  0xb7   :  { %v87_v55 = vsel %vm86_vm5, %v557_v48, %v83_v54 }
  0xb8   :  { %v88_v56 = vmul.f32 %v87_v55, %v75_v53 }
  0xba   :  { %v91_v58 = vperm.slane %v88_v56, 0  ;;  %v89_v59 = vmul.f32 %v88_v56, %v62_v37  ;;  %v147_v37 = vld [vmem:[%s848_s1 + $0x1c1] sm:$0x1] }
  0xbc   :  { %v90_v60 = vsub.f32 %v76_v57, %v89_v59  ;;  %v92_v61 = vmul.f32 %v91_v58, %v45_v15  ;;  %v247_v58 = vld [vmem:[%s848_s1 + $0xf8] sm:$0xff] }
  0xbd   :  { %259 = vmatpush.msra.mxu3 %v247_v58 }
  0xbe   :  { %v93_v62 = vperm.slane %v90_v60, 0 }
  0xc0   :  { %v94_v63 = vadd.f32 %v93_v62, %v92_v61  ;;  %v246_v61 = vld [vmem:[%s848_s1 + $0xf0] sm:$0xff] }
  0xc1   :  { %260 = vmatpush.msra.mxu3 %v246_v61  ;;  %v312_v61 = vld [vmem:[%s848_s1 + $0x100] sm:$0xff] }
  0xc2   :  { %v95_v0 = vmax.f32 %v94_v63, 0.0 }
  0xc4   :  { %544 = vmatmul.msk.f32.vlgmr.msra.gmra.mxu1 %vm11_vm0, %v95_v0  ;;  %v245_v0 = vld [vmem:[%s848_s1 + $0xe8] sm:$0xff] }
  0xc5   :  { %261 = vmatpush.msra.mxu3 %v245_v0 }
 0x141   :  { %v124_v1 = vpop.f32.mrf.mxu1 }
 0x142   :  { %v127_v2 = vsel %vm11_vm0, %v124_v1, 0.0  ;;  %v135_v3 = vmul.f32 %v124_v1, %v124_v1 }
 0x143   :  { %v128_v4 = vrot.slane %v127_v2, 4 }
 0x144   :  { %v136_v5 = vsel %vm11_vm0, %v135_v3, 0.0  ;;  %v244_v3 = vld [vmem:[%s848_s1 + $0xe0] sm:$0xff] }
 0x145   :  { %v129_v6 = vadd.f32 %v128_v4, %v127_v2  ;;  %v137_v7 = vrot.slane %v136_v5, 4  ;;  %262 = vmatpush.msra.mxu3 %v244_v3 }
 0x147   :  { %v130_v8 = vrot.slane %v129_v6, 2  ;;  %v138_v9 = vadd.f32 %v137_v7, %v136_v5  ;;  %v242_v7 = vld [vmem:[%s848_s1 + $0xd0] sm:$0xff] }
 0x149   :  { %v131_v11 = vadd.f32 %v130_v8, %v129_v6  ;;  %v139_v12 = vrot.slane %v138_v9, 2  ;;  %v243_v6 = vld [vmem:[%s848_s1 + $0xd8] sm:$0xff] }
 0x14a   :  { %263 = vmatpush.msra.mxu3 %v243_v6 }
 0x14b   :  { %v132_v14 = vrot.slane %v131_v11, 1  ;;  %v140_v15 = vadd.f32 %v139_v12, %v138_v9  ;;  %v240_v12 = vld [vmem:[%s848_s1 + $0xc0] sm:$0xff] }
 0x14c   :  { %264 = vmatpush.msra.mxu3 %v242_v7 }
 0x14d   :  { %v133_v17 = vadd.f32 %v132_v14, %v131_v11  ;;  %v141_v18 = vrot.slane %v140_v15, 1 }
 0x14e   :  { %265 = vmatpush.msra.mxu3 %v241_v10 }
 0x14f   :  { %v134_v20 = vmul.f32 %v133_v17, %v627_v33  ;;  %v142_v21 = vadd.f32 %v141_v18, %v140_v15 }
 0x150   :  { %266 = vmatpush.msra.mxu3 %v240_v12 }
 0x151   :  { %v143_v24 = vmul.f32 %v142_v21, %v627_v33  ;;  %v144_v25 = vmul.f32 %v134_v20, %v134_v20 }
 0x153   :  { %v145_v27 = vsub.f32 %v143_v24, %v144_v25  ;;  %v220_v24 = vld [vmem:[%s848_s1 + $0x1c9] sm:$0x1] }
 0x155   :  { %v146_v29 = vmax.f32 %v145_v27, 0.0 }
 0x157   :  { %v149_v30 = vadd.f32 1e-05, %v146_v29 }
 0x159   :  { %558 = vrsqrt.f32 %v149_v30  ;;  %vm156_vm7 = vweird.f32 %v149_v30 }
 0x15f   :  { %v559_v31 = vpop.eup %558 }
 0x160   :  { %v151_v32 = vmul.f32 %v559_v31, %v149_v30  ;;  %vm157_vm6 = vweird.f32 %v559_v31 }
 0x161   :  { %vm158_vm8 = vmor %vm156_vm7, %vm157_vm6 }
 0x162   :  { %v152_v34 = vmul.f32 %v559_v31, %v151_v32 }
 0x164   :  { %v153_v35 = vmul.f32 0.5, %v152_v34 }
 0x166   :  { %v154_v36 = vsub.f32 1.5, %v153_v35 }
 0x168   :  { %v155_v38 = vmul.f32 %v559_v31, %v154_v36 }
 0x16a   :  { %v159_v39 = vsel %vm158_vm8, %v559_v31, %v155_v38 }
 0x16b   :  { %v160_v40 = vmul.f32 %v159_v39, %v147_v37 }
 0x16d   :  { %v163_v42 = vperm.slane %v160_v40, 0  ;;  %v161_v43 = vmul.f32 %v160_v40, %v134_v20  ;;  %v219_v20 = vld [vmem:[%s848_s1 + $0x1c2] sm:$0x1] }
 0x16f   :  { %v162_v44 = vsub.f32 %v148_v41, %v161_v43  ;;  %v164_v45 = vmul.f32 %v163_v42, %v124_v1  ;;  %v319_v42 = vld [vmem:[%s848_s1 + $0x138] sm:$0xff] }
 0x170   :  { %331 = vmatpush.msrb.mxu0 %v319_v42 }
 0x171   :  { %v165_v46 = vperm.slane %v162_v44, 0 }
 0x173   :  { %v166_v47 = vadd.f32 %v165_v46, %v164_v45  ;;  %v318_v45 = vld [vmem:[%s848_s1 + $0x130] sm:$0xff] }
 0x174   :  { %332 = vmatpush.msrb.mxu0 %v318_v45  ;;  %v384_v45 = vld [vmem:[%s848_s1 + $0x140] sm:$0xff] }
 0x175   :  { %v167_v48 = vmax.f32 %v166_v47, 0.0 }
 0x177   :  { %545 = vmatmul.msk.f32.vlgmr.msra.gmra.mxu2 %vm11_vm0, %v167_v48  ;;  %v317_v48 = vld [vmem:[%s848_s1 + $0x128] sm:$0xff] }
 0x178   :  { %333 = vmatpush.msrb.mxu0 %v317_v48 }
 0x1fa   :  { %v196_v49 = vpop.f32.mrf.mxu2 }
 0x1fb   :  { %v199_v50 = vsel %vm11_vm0, %v196_v49, 0.0  ;;  %v207_v51 = vmul.f32 %v196_v49, %v196_v49 }
 0x1fc   :  { %v200_v52 = vrot.slane %v199_v50, 4 }
 0x1fd   :  { %v208_v53 = vsel %vm11_vm0, %v207_v51, 0.0  ;;  %v316_v51 = vld [vmem:[%s848_s1 + $0x120] sm:$0xff] }
 0x1fe   :  { %v201_v54 = vadd.f32 %v200_v52, %v199_v50  ;;  %v209_v55 = vrot.slane %v208_v53, 4  ;;  %334 = vmatpush.msrb.mxu0 %v316_v51 }
 0x200   :  { %v202_v56 = vrot.slane %v201_v54, 2  ;;  %v210_v57 = vadd.f32 %v209_v55, %v208_v53 }
 0x202   :  { %v203_v59 = vadd.f32 %v202_v56, %v201_v54  ;;  %v211_v60 = vrot.slane %v210_v57, 2  ;;  %v315_v54 = vld [vmem:[%s848_s1 + $0x118] sm:$0xff] }
 0x203   :  { %335 = vmatpush.msrb.mxu0 %v315_v54 }
 0x204   :  { %v204_v62 = vrot.slane %v203_v59, 1  ;;  %v212_v63 = vadd.f32 %v211_v60, %v210_v57  ;;  %v314_v57 = vld [vmem:[%s848_s1 + $0x110] sm:$0xff] }
 0x205   :  { %336 = vmatpush.msrb.mxu0 %v314_v57 }
 0x206   :  { %v205_v1 = vadd.f32 %v204_v62, %v203_v59  ;;  %v213_v2 = vrot.slane %v212_v63, 1  ;;  %v313_v59 = vld [vmem:[%s848_s1 + $0x108] sm:$0xff] }
 0x207   :  { %337 = vmatpush.msrb.mxu0 %v313_v59 }
 0x208   :  { %v206_v4 = vmul.f32 %v205_v1, %v627_v33  ;;  %v214_v5 = vadd.f32 %v213_v2, %v212_v63 }
 0x209   :  { %338 = vmatpush.msrb.mxu0 %v312_v61 }
 0x20a   :  { %v215_v8 = vmul.f32 %v214_v5, %v627_v33  ;;  %v216_v9 = vmul.f32 %v206_v4, %v206_v4 }
 0x20c   :  { %v217_v11 = vsub.f32 %v215_v8, %v216_v9  ;;  %v292_v8 = vld [vmem:[%s848_s1 + $0x1ca] sm:$0x1] }
 0x20e   :  { %v218_v13 = vmax.f32 %v217_v11, 0.0 }
 0x210   :  { %v221_v14 = vadd.f32 1e-05, %v218_v13 }
 0x212   :  { %560 = vrsqrt.f32 %v221_v14  ;;  %vm228_vm10 = vweird.f32 %v221_v14 }
 0x218   :  { %v561_v15 = vpop.eup %560 }
 0x219   :  { %v223_v16 = vmul.f32 %v561_v15, %v221_v14  ;;  %vm229_vm9 = vweird.f32 %v561_v15 }
 0x21a   :  { %vm230_vm11 = vmor %vm228_vm10, %vm229_vm9  ;;  %vm537_vm9 = vcmask 7168  }
 0x21b   :  { %v224_v17 = vmul.f32 %v561_v15, %v223_v16 }
 0x21d   :  { %v225_v18 = vmul.f32 0.5, %v224_v17 }
 0x21f   :  { %v226_v19 = vsub.f32 1.5, %v225_v18 }
 0x221   :  { %v227_v21 = vmul.f32 %v561_v15, %v226_v19 }
 0x223   :  { %v231_v22 = vsel %vm230_vm11, %v561_v15, %v227_v21 }
 0x224   :  { %v232_v23 = vmul.f32 %v231_v22, %v219_v20 }
 0x226   :  { %v235_v25 = vperm.slane %v232_v23, 0  ;;  %v233_v26 = vmul.f32 %v232_v23, %v206_v4  ;;  %v291_v4 = vld [vmem:[%s848_s1 + $0x1c3] sm:$0x1] }
 0x228   :  { %v234_v27 = vsub.f32 %v220_v24, %v233_v26  ;;  %v236_v28 = vmul.f32 %v235_v25, %v196_v49  ;;  %v391_v25 = vld [vmem:[%s848_s1 + $0x178] sm:$0xff] }
 0x229   :  { %403 = vmatpush.msrb.mxu1 %v391_v25 }
 0x22a   :  { %v237_v29 = vperm.slane %v234_v27, 0 }
 0x22c   :  { %v238_v30 = vadd.f32 %v237_v29, %v236_v28  ;;  %v390_v28 = vld [vmem:[%s848_s1 + $0x170] sm:$0xff] }
 0x22d   :  { %404 = vmatpush.msrb.mxu1 %v390_v28  ;;  %v456_v28 = vld [vmem:[%s848_s1 + $0x180] sm:$0xff] }
 0x22e   :  { %v239_v31 = vmax.f32 %v238_v30, 0.0 }
 0x230   :  { %546 = vmatmul.msk.f32.vlgmr.msra.gmra.mxu3 %vm11_vm0, %v239_v31  ;;  %v389_v31 = vld [vmem:[%s848_s1 + $0x168] sm:$0xff] }
 0x231   :  { %405 = vmatpush.msrb.mxu1 %v389_v31 }
 0x2b3   :  { %v268_v32 = vpop.f32.mrf.mxu3 }
 0x2b4   :  { %v271_v34 = vsel %vm11_vm0, %v268_v32, 0.0  ;;  %v279_v35 = vmul.f32 %v268_v32, %v268_v32 }
 0x2b5   :  { %v272_v36 = vrot.slane %v271_v34, 4 }
 0x2b6   :  { %v280_v37 = vsel %vm11_vm0, %v279_v35, 0.0  ;;  %v388_v35 = vld [vmem:[%s848_s1 + $0x160] sm:$0xff] }
 0x2b7   :  { %v273_v38 = vadd.f32 %v272_v36, %v271_v34  ;;  %v281_v39 = vrot.slane %v280_v37, 4  ;;  %406 = vmatpush.msrb.mxu1 %v388_v35 }
 0x2b9   :  { %v274_v40 = vrot.slane %v273_v38, 2  ;;  %v282_v41 = vadd.f32 %v281_v39, %v280_v37 }
 0x2bb   :  { %v275_v43 = vadd.f32 %v274_v40, %v273_v38  ;;  %v283_v44 = vrot.slane %v282_v41, 2  ;;  %v387_v38 = vld [vmem:[%s848_s1 + $0x158] sm:$0xff] }
 0x2bc   :  { %407 = vmatpush.msrb.mxu1 %v387_v38 }
 0x2bd   :  { %v276_v46 = vrot.slane %v275_v43, 1  ;;  %v284_v47 = vadd.f32 %v283_v44, %v282_v41  ;;  %v386_v41 = vld [vmem:[%s848_s1 + $0x150] sm:$0xff] }
 0x2be   :  { %408 = vmatpush.msrb.mxu1 %v386_v41 }
 0x2bf   :  { %v277_v49 = vadd.f32 %v276_v46, %v275_v43  ;;  %v285_v50 = vrot.slane %v284_v47, 1  ;;  %v385_v43 = vld [vmem:[%s848_s1 + $0x148] sm:$0xff] }
 0x2c0   :  { %409 = vmatpush.msrb.mxu1 %v385_v43 }
 0x2c1   :  { %v278_v52 = vmul.f32 %v277_v49, %v627_v33  ;;  %v286_v53 = vadd.f32 %v285_v50, %v284_v47 }
 0x2c2   :  { %410 = vmatpush.msrb.mxu1 %v384_v45 }
 0x2c3   :  { %v287_v55 = vmul.f32 %v286_v53, %v627_v33  ;;  %v288_v56 = vmul.f32 %v278_v52, %v278_v52 }
 0x2c5   :  { %v289_v58 = vsub.f32 %v287_v55, %v288_v56  ;;  %v364_v56 = vld [vmem:[%s848_s1 + $0x1cb] sm:$0x1] }
 0x2c7   :  { %v290_v60 = vmax.f32 %v289_v58, 0.0 }
 0x2c9   :  { %v293_v62 = vadd.f32 1e-05, %v290_v60 }
 0x2cb   :  { %562 = vrsqrt.f32 %v293_v62  ;;  %vm300_vm13 = vweird.f32 %v293_v62 }
 0x2d1   :  { %v563_v63 = vpop.eup %562 }
 0x2d2   :  { %v295_v0 = vmul.f32 %v563_v63, %v293_v62  ;;  %vm301_vm12 = vweird.f32 %v563_v63 }
 0x2d3   :  { %vm302_vm14 = vmor %vm300_vm13, %vm301_vm12 }
 0x2d4   :  { %v296_v1 = vmul.f32 %v563_v63, %v295_v0 }
 0x2d6   :  { %v297_v2 = vmul.f32 0.5, %v296_v1 }
 0x2d8   :  { %v298_v3 = vsub.f32 1.5, %v297_v2 }
 0x2da   :  { %v299_v5 = vmul.f32 %v563_v63, %v298_v3 }
 0x2dc   :  { %v303_v6 = vsel %vm302_vm14, %v563_v63, %v299_v5 }
 0x2dd   :  { %v304_v7 = vmul.f32 %v303_v6, %v291_v4 }
 0x2df   :  { %v305_v9 = vmul.f32 %v304_v7, %v278_v52  ;;  %v307_v10 = vperm.slane %v304_v7, 0  ;;  %v363_v52 = vld [vmem:[%s848_s1 + $0x1c4] sm:$0x1] }
 0x2e1   :  { %v306_v11 = vsub.f32 %v292_v8, %v305_v9  ;;  %v308_v12 = vmul.f32 %v307_v10, %v268_v32  ;;  %v463_v9 = vld [vmem:[%s848_s1 + $0x1b8] sm:$0xff] }
 0x2e2   :  { %475 = vmatpush.msrb.mxu2 %v463_v9 }
 0x2e3   :  { %v309_v13 = vperm.slane %v306_v11, 0 }
 0x2e5   :  { %v310_v14 = vadd.f32 %v309_v13, %v308_v12  ;;  %v462_v12 = vld [vmem:[%s848_s1 + $0x1b0] sm:$0xff] }
 0x2e6   :  { %476 = vmatpush.msrb.mxu2 %v462_v12 }
 0x2e7   :  { %v311_v15 = vmax.f32 %v310_v14, 0.0 }
 0x2e9   :  { %547 = vmatmul.msk.f32.vlgmr.msrb.gmra.mxu0 %vm11_vm0, %v311_v15  ;;  %v461_v15 = vld [vmem:[%s848_s1 + $0x1a8] sm:$0xff] }
 0x2ea   :  { %477 = vmatpush.msrb.mxu2 %v461_v15 }
 0x366   :  { %v340_v16 = vpop.f32.mrf.mxu0 }
 0x367   :  { %v343_v17 = vsel %vm11_vm0, %v340_v16, 0.0  ;;  %v351_v18 = vmul.f32 %v340_v16, %v340_v16 }
 0x368   :  { %v344_v19 = vrot.slane %v343_v17, 4 }
 0x369   :  { %v352_v20 = vsel %vm11_vm0, %v351_v18, 0.0  ;;  %v460_v18 = vld [vmem:[%s848_s1 + $0x1a0] sm:$0xff] }
 0x36a   :  { %v345_v21 = vadd.f32 %v344_v19, %v343_v17  ;;  %v353_v22 = vrot.slane %v352_v20, 4  ;;  %478 = vmatpush.msrb.mxu2 %v460_v18 }
 0x36c   :  { %v346_v23 = vrot.slane %v345_v21, 2  ;;  %v354_v24 = vadd.f32 %v353_v22, %v352_v20 }
 0x36e   :  { %v347_v26 = vadd.f32 %v346_v23, %v345_v21  ;;  %v355_v27 = vrot.slane %v354_v24, 2  ;;  %v459_v21 = vld [vmem:[%s848_s1 + $0x198] sm:$0xff] }
 0x36f   :  { %479 = vmatpush.msrb.mxu2 %v459_v21  ;;  %v552_v21 = vld [vmem:[%s848_s1 + $0x1ce] ss:$0 sm:$0xff] }
 0x370   :  { %v348_v29 = vrot.slane %v347_v26, 1  ;;  %v356_v30 = vadd.f32 %v355_v27, %v354_v24  ;;  %v458_v24 = vld [vmem:[%s848_s1 + $0x190] sm:$0xff] }
 0x371   :  { %480 = vmatpush.msrb.mxu2 %v458_v24 }
 0x372   :  { %v349_v32 = vadd.f32 %v348_v29, %v347_v26  ;;  %v357_v34 = vrot.slane %v356_v30, 1  ;;  %v457_v26 = vld [vmem:[%s848_s1 + $0x188] sm:$0xff] }
 0x373   :  { %481 = vmatpush.msrb.mxu2 %v457_v26 }
 0x374   :  { %v350_v36 = vmul.f32 %v349_v32, %v627_v33  ;;  %v358_v37 = vadd.f32 %v357_v34, %v356_v30 }
 0x375   :  { %482 = vmatpush.msrb.mxu2 %v456_v28 }
 0x376   :  { %v359_v39 = vmul.f32 %v358_v37, %v627_v33  ;;  %v360_v40 = vmul.f32 %v350_v36, %v350_v36 }
 0x378   :  { %v361_v42 = vsub.f32 %v359_v39, %v360_v40  ;;  %v436_v40 = vld [vmem:[%s848_s1 + $0x1cc] sm:$0x1] }
 0x37a   :  { %v362_v44 = vmax.f32 %v361_v42, 0.0 }
 0x37c   :  { %v365_v46 = vadd.f32 1e-05, %v362_v44 }
 0x37e   :  { %564 = vrsqrt.f32 %v365_v46  ;;  %vm372_vm1 = vweird.f32 %v365_v46 }
 0x384   :  { %v565_v47 = vpop.eup %564 }
 0x385   :  { %v367_v48 = vmul.f32 %v565_v47, %v365_v46  ;;  %vm373_vm15 = vweird.f32 %v565_v47 }
 0x386   :  { %vm374_vm2 = vmor %vm372_vm1, %vm373_vm15 }
 0x387   :  { %v368_v49 = vmul.f32 %v565_v47, %v367_v48 }
 0x389   :  { %v369_v50 = vmul.f32 0.5, %v368_v49 }
 0x38b   :  { %v370_v51 = vsub.f32 1.5, %v369_v50 }
 0x38d   :  { %v371_v53 = vmul.f32 %v565_v47, %v370_v51 }
 0x38f   :  { %v375_v54 = vsel %vm374_vm2, %v565_v47, %v371_v53 }
 0x390   :  { %v376_v55 = vmul.f32 %v375_v54, %v363_v52 }
 0x392   :  { %v377_v57 = vmul.f32 %v376_v55, %v350_v36  ;;  %v379_v58 = vperm.slane %v376_v55, 0  ;;  %v435_v36 = vld [vmem:[%s848_s1 + $0x1c5] sm:$0x1] }
 0x394   :  { %v378_v59 = vsub.f32 %v364_v56, %v377_v57  ;;  %v380_v60 = vmul.f32 %v379_v58, %v340_v16 }
 0x396   :  { %v381_v61 = vperm.slane %v378_v59, 0 }
 0x398   :  { %v382_v62 = vadd.f32 %v381_v61, %v380_v60 }
 0x39a   :  { %v383_v63 = vmax.f32 %v382_v62, 0.0 }
 0x39c   :  { %548 = vmatmul.msk.f32.vlgmr.msrb.gmra.mxu1 %vm11_vm0, %v383_v63 }
 0x419   :  { %v412_v0 = vpop.f32.mrf.mxu1 }
 0x41a   :  { %v415_v1 = vsel %vm11_vm0, %v412_v0, 0.0  ;;  %v423_v2 = vmul.f32 %v412_v0, %v412_v0 }
 0x41b   :  { %v416_v3 = vrot.slane %v415_v1, 4 }
 0x41c   :  { %v424_v4 = vsel %vm11_vm0, %v423_v2, 0.0 }
 0x41d   :  { %v417_v5 = vadd.f32 %v416_v3, %v415_v1  ;;  %v425_v6 = vrot.slane %v424_v4, 4 }
 0x41f   :  { %v418_v7 = vrot.slane %v417_v5, 2  ;;  %v426_v8 = vadd.f32 %v425_v6, %v424_v4 }
 0x421   :  { %v419_v10 = vadd.f32 %v418_v7, %v417_v5  ;;  %v427_v11 = vrot.slane %v426_v8, 2 }
 0x423   :  { %v420_v13 = vrot.slane %v419_v10, 1  ;;  %v428_v14 = vadd.f32 %v427_v11, %v426_v8  ;;  %v507_v11 = vld [vmem:[%s848_s1 + $0x1c6] sm:$0x1] }
 0x425   :  { %v421_v16 = vadd.f32 %v420_v13, %v419_v10  ;;  %v429_v17 = vrot.slane %v428_v14, 1 }
 0x427   :  { %v422_v19 = vmul.f32 %v421_v16, %v627_v33  ;;  %v430_v20 = vadd.f32 %v429_v17, %v428_v14  ;;  %v508_v14 = vld [vmem:[%s848_s1 + $0x1cd] sm:$0x1] }
 0x429   :  { %v431_v22 = vmul.f32 %v430_v20, %v627_v33  ;;  %v432_v23 = vmul.f32 %v422_v19, %v422_v19 }
 0x42b   :  { %v433_v25 = vsub.f32 %v431_v22, %v432_v23 }
 0x42d   :  { %v434_v27 = vmax.f32 %v433_v25, 0.0  ;;  %v553_v25 = vld [vmem:[%s848_s1 + $0x1cf] ss:$0 sm:$0xff] }
 0x42f   :  { %v437_v29 = vadd.f32 1e-05, %v434_v27 }
 0x431   :  { %566 = vrsqrt.f32 %v437_v29  ;;  %vm444_vm4 = vweird.f32 %v437_v29 }
 0x437   :  { %v567_v30 = vpop.eup %566 }
 0x438   :  { %v439_v31 = vmul.f32 %v567_v30, %v437_v29  ;;  %vm445_vm3 = vweird.f32 %v567_v30 }
 0x439   :  { %vm446_vm5 = vmor %vm444_vm4, %vm445_vm3 }
 0x43a   :  { %v440_v32 = vmul.f32 %v567_v30, %v439_v31 }
 0x43c   :  { %v441_v34 = vmul.f32 0.5, %v440_v32 }
 0x43e   :  { %v442_v35 = vsub.f32 1.5, %v441_v34 }
 0x440   :  { %v443_v37 = vmul.f32 %v567_v30, %v442_v35 }
 0x442   :  { %v447_v38 = vsel %vm446_vm5, %v567_v30, %v443_v37 }
 0x443   :  { %v448_v39 = vmul.f32 %v447_v38, %v435_v36 }
 0x445   :  { %v449_v41 = vmul.f32 %v448_v39, %v422_v19  ;;  %v451_v42 = vperm.slane %v448_v39, 0 }
 0x447   :  { %v450_v43 = vsub.f32 %v436_v40, %v449_v41  ;;  %v452_v44 = vmul.f32 %v451_v42, %v412_v0 }
 0x449   :  { %v453_v45 = vperm.slane %v450_v43, 0 }
 0x44b   :  { %v454_v46 = vadd.f32 %v453_v45, %v452_v44 }
 0x44d   :  { %v455_v47 = vmax.f32 %v454_v46, 0.0 }
 0x44f   :  { %549 = vmatmul.msk.f32.vlgmr.msrb.gmra.mxu2 %vm11_vm0, %v455_v47 }
 0x4d2   :  { %v484_v48 = vpop.f32.mrf.mxu2 }
 0x4d3   :  { %v487_v49 = vsel %vm11_vm0, %v484_v48, 0.0  ;;  %v495_v50 = vmul.f32 %v484_v48, %v484_v48 }
 0x4d4   :  { %v488_v51 = vrot.slane %v487_v49, 4 }
 0x4d5   :  { %v496_v52 = vsel %vm11_vm0, %v495_v50, 0.0 }
 0x4d6   :  { %v489_v53 = vadd.f32 %v488_v51, %v487_v49  ;;  %v497_v54 = vrot.slane %v496_v52, 4 }
 0x4d8   :  { %v490_v55 = vrot.slane %v489_v53, 2  ;;  %v498_v56 = vadd.f32 %v497_v54, %v496_v52 }
 0x4da   :  { %v491_v57 = vadd.f32 %v490_v55, %v489_v53  ;;  %v499_v58 = vrot.slane %v498_v56, 2 }
 0x4dc   :  { %v492_v59 = vrot.slane %v491_v57, 1  ;;  %v500_v60 = vadd.f32 %v499_v58, %v498_v56 }
 0x4de   :  { %v493_v61 = vadd.f32 %v492_v59, %v491_v57  ;;  %v501_v62 = vrot.slane %v500_v60, 1 }
 0x4e0   :  { %v494_v63 = vmul.f32 %v493_v61, %v627_v33  ;;  %v502_v0 = vadd.f32 %v501_v62, %v500_v60 }
 0x4e2   :  { %v503_v1 = vmul.f32 %v502_v0, %v627_v33  ;;  %v504_v2 = vmul.f32 %v494_v63, %v494_v63 }
 0x4e4   :  { %v505_v3 = vsub.f32 %v503_v1, %v504_v2 }
 0x4e6   :  { %v506_v4 = vmax.f32 %v505_v3, 0.0 }
 0x4e8   :  { %v509_v5 = vadd.f32 1e-05, %v506_v4 }
 0x4ea   :  { %568 = vrsqrt.f32 %v509_v5  ;;  %vm516_vm7 = vweird.f32 %v509_v5 }
 0x4f0   :  { %v569_v6 = vpop.eup %568 }
 0x4f1   :  { %v511_v7 = vmul.f32 %v569_v6, %v509_v5  ;;  %vm517_vm6 = vweird.f32 %v569_v6 }
 0x4f2   :  { %vm518_vm8 = vmor %vm516_vm7, %vm517_vm6 }
 0x4f3   :  { %v512_v8 = vmul.f32 %v569_v6, %v511_v7 }
 0x4f5   :  { %v513_v9 = vmul.f32 0.5, %v512_v8 }
 0x4f7   :  { %v514_v10 = vsub.f32 1.5, %v513_v9 }
 0x4f9   :  { %v515_v12 = vmul.f32 %v569_v6, %v514_v10 }
 0x4fb   :  { %v519_v13 = vsel %vm518_vm8, %v569_v6, %v515_v12 }
 0x4fc   :  { %v520_v33 = vmul.f32 %v519_v13, %v507_v11 }
 0x4fe   :  { %v521_v15 = vmul.f32 %v520_v33, %v494_v63  ;;  %v523_v16 = vperm.slane %v520_v33, 0 }
 0x500   :  { %v522_v17 = vsub.f32 %v508_v14, %v521_v15  ;;  %v524_v18 = vmul.f32 %v523_v16, %v484_v48 }
 0x502   :  { %v525_v19 = vperm.slane %v522_v17, 0 }
 0x504   :  { %v526_v20 = vadd.f32 %v525_v19, %v524_v18 }
 0x506   :  { %v527_v22 = vmax.f32 %v526_v20, 0.0 }
 0x508   :  { %v531_v23 = vmul.f32 %v552_v21, %v527_v22 }
 0x50a   :  { %v532_v24 = vsel %vm11_vm0, %v531_v23, 0.0 }
 0x50b   :  { %533 = vadd.xlane.f32.xlu0 %v532_v24 }
 0x57e   :  { %v534_v26 = vpop.xlane.xlu0 %533 }
 0x57f   :  { %v536_v27 = vadd.f32 %v553_v25, %v534_v26 }
 0x581   :  { %538 = vst.msk [vmem:[%s850_s2] sm:$0xff] %vm537_vm9, %v536_v27 }

</bundles_post_ra>
